<compile_context>
chip_gen: v5e
topology: v5e:2x2
jax: 0.10.0
libtpu: 0.0.40
codegen_flags: <defaults>
</compile_context>

<pallas_src>
import jax
import jax.numpy as jnp
from jax.experimental import pallas as pl
from jax.experimental.pallas import tpu as pltpu


def _round_up(v: int, m: int) -> int:
    return ((v + m - 1) // m) * m


def _vmem_capacity_bytes() -> int:
    """Physical VMEM per TensorCore (v5e/v6e: 128 MiB, v7x: 64 MiB)."""
    try:
        cap = int(getattr(pltpu.get_tpu_info(), "vmem_capacity_bytes", 0))
        if cap > 0:
            return cap
    except Exception:
        pass
    return 64 << 20  # conservative default (v7x per-TC VMEM)


def _tile_bytes(rows: int, cols: int, itemsize: int) -> int:
    """Approx bytes of one (8,128)-padded VMEM tile."""
    return _round_up(max(rows, 1), 8) * _round_up(max(cols, 1), 128) * itemsize


def _pick_batch_tile(B: int, tb_cap: int) -> int:
    """Batch tile (rows land on the *lane* axis of the output).

    - multiple of 8 (sublane granularity), multiple of 128 once large (dense vst),
    - >= 2 grid steps whenever B >= 16 so the "parallel" batch axis can shard across
      v7x's two TensorCores (neutral on single-TC v5e/v6e),
    - capped generation-aware (512 on 64 MiB-VMEM parts, 2048 on 128 MiB parts).
    """
    if B < 16:
        return _round_up(max(B, 1), 8)
    tb = min(_round_up(-(-B // 2), 8), tb_cap)
    if tb >= 128:
        tb = (tb // 128) * 128  # lane-dense, unmasked stores
    return max(8, tb)


def _pick_k_tile(F: int, H: int, itemsize: int) -> int:
    """Contraction tile over F: whole F while the (F, H) weight block is modest,
    otherwise a 512-wide K tile (x / W_emb are zero-padded along F, which is exact)."""
    if _tile_bytes(F, H, itemsize) <= (8 << 20):
        return F
    return 512


def _vmem_need(TB: int, TK: int, H: int, nk: int, in_itemsize: int) -> int:
    nbuf_w = 2 if nk > 1 else 1  # K-tiled weight stream double-buffers; resident one doesn't
    return (
        2 * _tile_bytes(TB, TK, in_itemsize)        # x tile (double-buffered)
        + nbuf_w * _tile_bytes(TK, H, in_itemsize)  # embedding weight block(s)
        + 2 * _tile_bytes(1, H, 4)                  # b_emb + fused weight row (single-buffered)
        + 2 * _tile_bytes(1, TB, 4)                 # output row (double-buffered)
        + _tile_bytes(TB, H, 4)                     # f32 accumulator scratch
    )


def _moe_fused_kernel(x_ref, wemb_ref, bemb_ref, wf_ref, bf_ref, o_ref, acc_ref):
    # x_ref    : [TB, TK]  (bf16 or f32)   wemb_ref : [TK, TK->H]  (bf16 or f32)
    # bemb_ref : [1, H]  f32               wf_ref   : [1, H] f32  (= W_exp @ gate)
    # bf_ref   : [1, 1]  f32 in SMEM       (= b_exp @ gate)
    # o_ref    : [1, 1, TB] f32            (batch on the lane axis -> dense stores)
    # acc_ref  : [TB, H] f32 scratch       (partial x @ W_emb across the K grid axis)
    k = pl.program_id(1)

    @pl.when(k == 0)
    def _():
        acc_ref[...] = jnp.zeros_like(acc_ref)

    acc_ref[...] += jnp.dot(x_ref[...], wemb_ref[...],
                            preferred_element_type=jnp.float32)

    @pl.when(k == pl.num_programs(1) - 1)
    def _():
        h = jnp.maximum(acc_ref[...] + bemb_ref[...], 0.0)          # [TB, H], f32
        # Fused gated expert mixture: wf [1,H] @ h^T -> [1, TB] on the MXU (trans_b;
        # no in-kernel transpose, no cross-lane reduce, output already lane-dense).
        s = jax.lax.dot_general(
            wf_ref[...], h,
            dimension_numbers=(((1,), (1,)), ((), ())),
            preferred_element_type=jnp.float32,
        )                                                            # [1, TB]
        o_ref[...] = jax.nn.sigmoid(s + bf_ref[0, 0])[None]         # [1, 1, TB]


def _xla_forward(x, w_emb, b_emb, wf, bf):
    h = jnp.maximum(x @ w_emb + b_emb.reshape(-1), 0.0)
    return jax.nn.sigmoid(h @ wf.reshape(-1) + bf.reshape(()))


def onnx_sliced_model(x, w_emb, b_emb, w_exp, b_exp, gate, *,
                      compute_dtype=jnp.bfloat16, use_pallas=None):
    """x: [B, F] -> [B] float32 (sigmoid of gated expert mixture)."""
    B, F = x.shape
    H = w_emb.shape[1]

    x = x.astype(jnp.float32)
    w_emb = w_emb.astype(jnp.float32)
    bemb2 = b_emb.reshape(1, H).astype(jnp.float32)

    # Fold experts + gate + expert-sum (all linear after the ReLU) into a single
    # [1, H] weight row and a scalar bias.
    wf = jnp.dot(w_exp.astype(jnp.float32), gate.astype(jnp.float32)).reshape(1, H)
    bf = jnp.dot(b_exp.astype(jnp.float32), gate.astype(jnp.float32)).reshape(1, 1)

    if use_pallas is None:
        # Below ~1M streamed elements the kernel is pure launch/per-step overhead;
        # XLA's fused dot is as fast. The demo forces the Pallas path explicitly.
        use_pallas = (B * F) >= (1 << 20)
    if not use_pallas:
        return _xla_forward(x, w_emb, bemb2, wf, bf)

    # bf16 (default) input stream; accumulation and epilogue stay f32.
    in_itemsize = jnp.dtype(compute_dtype).itemsize
    x_in = x.astype(compute_dtype)
    w_in = w_emb.astype(compute_dtype)

    vmem_cap = _vmem_capacity_bytes()
    tb_cap = 2048 if vmem_cap >= (100 << 20) else 512

    TB = _pick_batch_tile(B, tb_cap)
    TK = _pick_k_tile(F, H, in_itemsize)
    nk = -(-F // TK)
    # Shrink TB if the footprint would exceed ~60% of physical VMEM.
    while TB > 8 and _vmem_need(TB, TK, H, nk, in_itemsize) > int(0.6 * vmem_cap):
        TB = max(8, _round_up(TB // 2, 8))

    num_tiles = -(-B // TB)
    B_pad = num_tiles * TB
    F_pad = nk * TK
    if B_pad != B or F_pad != F:
        x_in = jnp.pad(x_in, ((0, B_pad - B), (0, F_pad - F)))   # zero rows/cols: exact
    if F_pad != F:
        w_in = jnp.pad(w_in, ((0, F_pad - F), (0, 0)))

    need = _vmem_need(TB, TK, H, nk, in_itemsize)
    vmem_limit = int(min(max(need + max(need // 4, 4 << 20), 16 << 20),
                         (vmem_cap * 3) // 4))

    # Constant-index blocks only need a single buffer (saves VMEM, esp. on v7x).
    const_mode = pl.Buffered(1)
    wemb_mode = pl.Buffered(1) if nk == 1 else None

    out = pl.pallas_call(
        _moe_fused_kernel,
        out_shape=jax.ShapeDtypeStruct((num_tiles, 1, TB), jnp.float32),
        grid_spec=pltpu.PrefetchScalarGridSpec(
            num_scalar_prefetch=0,
            grid=(num_tiles, nk),
            in_specs=[
                pl.BlockSpec((TB, TK), lambda i, k: (i, k)),                  # x tile
                pl.BlockSpec((TK, H), lambda i, k: (k, 0),
                             pipeline_mode=wemb_mode),                        # W_emb block
                pl.BlockSpec((1, H), lambda i, k: (0, 0),
                             pipeline_mode=const_mode),                       # b_emb
                pl.BlockSpec((1, H), lambda i, k: (0, 0),
                             pipeline_mode=const_mode),                       # wf (fused experts*gate)
                pl.BlockSpec(memory_space=pltpu.MemorySpace.SMEM),            # bf scalar
            ],
            out_specs=pl.BlockSpec((1, 1, TB), lambda i, k: (i, 0, 0)),       # lane-dense row
            scratch_shapes=[pltpu.VMEM((TB, H), jnp.float32)],                # f32 accumulator
        ),
        compiler_params=pltpu.CompilerParams(
            dimension_semantics=("parallel", "arbitrary"),
            vmem_limit_bytes=vmem_limit,
        ),
    )(x_in, w_in, bemb2, wf, bf)

    return out.reshape(B_pad)[:B]


def _reference(x, w_emb, b_emb, w_exp, b_exp, gate):
    # Unfused math, mirroring the PyTorch module exactly.
    h = jnp.maximum(x @ w_emb + b_emb, 0.0)
    e = h @ w_exp + b_exp                        # [B, E] (column e = expert e's scalar output)
    s = jnp.sum(e * gate[None, :], axis=1)       # gate * stacked outputs, sum over experts
    return jax.nn.sigmoid(s)


if __name__ == "__main__":
    B, F, H, E = 8, 32, 64, 4   # batch, in-features, embedding hidden, num experts

    key = jax.random.PRNGKey(0)
    k_x, k_we, k_be, k_wx, k_bx, k_g, k_x2 = jax.random.split(key, 7)

    x = jax.random.normal(k_x, (B, F), dtype=jnp.float32)

    # deterministic synthetic parameters (stand-ins for embedding / experts / self.weight)
    w_emb = jax.random.normal(k_we, (F, H), dtype=jnp.float32) * 0.1
    b_emb = jax.random.normal(k_be, (H,), dtype=jnp.float32) * 0.1
    w_exp = jax.random.normal(k_wx, (H, E), dtype=jnp.float32) * 0.1  # E experts: Linear(H -> 1)
    b_exp = jax.random.normal(k_bx, (E,), dtype=jnp.float32) * 0.1
    gate = jax.random.normal(k_g, (E,), dtype=jnp.float32)            # self.weight, shape [E]

    ref = _reference(x, w_emb, b_emb, w_exp, b_exp, gate)

    # 1) Exact-precision Pallas path (validates kernel semantics tightly).
    out32 = jax.block_until_ready(
        onnx_sliced_model(x, w_emb, b_emb, w_exp, b_exp, gate,
                          compute_dtype=jnp.float32, use_pallas=True))
    assert out32.shape == (B,)
    assert jnp.allclose(out32, ref, atol=1e-5, rtol=1e-5), (out32, ref)

    # 2) Default perf path (bf16 x / W_emb stream, f32 accumulate + epilogue).
    out16 = jax.block_until_ready(
        onnx_sliced_model(x, w_emb, b_emb, w_exp, b_exp, gate, use_pallas=True))
    assert out16.shape == (B,)
    assert jnp.allclose(out16, ref, atol=1e-2, rtol=0.0), (out16, ref)

    # 3) Batch that exercises padding + two "parallel" grid steps (B=20 -> TB=16, 2 tiles).
    B2 = 20
    x2 = jax.random.normal(k_x2, (B2, F), dtype=jnp.float32)
    ref2 = _reference(x2, w_emb, b_emb, w_exp, b_exp, gate)
    out2 = jax.block_until_ready(
        onnx_sliced_model(x2, w_emb, b_emb, w_exp, b_exp, gate,
                          compute_dtype=jnp.float32, use_pallas=True))
    assert out2.shape == (B2,)
    assert jnp.allclose(out2, ref2, atol=1e-5, rtol=1e-5), (out2, ref2)

    print("KERNEL_OK")
</pallas_src>

<mosaic_0001>
module attributes {stable_mosaic.version = 11 : i64} {
  func.func @_moe_fused_kernel(%arg0: i32, %arg1: i32, %arg2: memref<8x32xf32, #tpu.memory_space<vmem>>, %arg3: memref<32x64xf32, #tpu.memory_space<vmem>>, %arg4: memref<1x64xf32, #tpu.memory_space<vmem>>, %arg5: memref<1x64xf32, #tpu.memory_space<vmem>>, %arg6: memref<1x1xf32, #tpu.memory_space<smem>>, %arg7: memref<1x1x8xf32, #tpu.memory_space<vmem>>, %arg8: memref<8x64xf32, #tpu.memory_space<vmem>>) attributes {dimension_semantics = [#tpu.dimension_semantics<parallel>, #tpu.dimension_semantics<arbitrary>], iteration_bounds = array<i64: 1, 1>, scalar_prefetch = 0 : i64, scratch_operands = 1 : i64, tpu.core_type = #tpu.core_type<tc>, window_params = [{transform_indices = @transform_0, window_bounds = array<i64: 8, 32>}, {pipeline_mode = #tpu.pipeline_mode<synchronous>, transform_indices = @transform_1, window_bounds = array<i64: 32, 64>}, {pipeline_mode = #tpu.pipeline_mode<synchronous>, transform_indices = @transform_2, window_bounds = array<i64: 1, 64>}, {pipeline_mode = #tpu.pipeline_mode<synchronous>, transform_indices = @transform_3, window_bounds = array<i64: 1, 64>}, {transform_indices = @transform_4, window_bounds = array<i64: 1, 1>}, {transform_indices = @transform_5, window_bounds = array<i64: 1, 1, 8>}]} {
    %c0_i32 = arith.constant 0 : i32
    %0 = arith.cmpi eq, %arg1, %c0_i32 : i32
    %1 = arith.extui %0 : i1 to i32
    %c0_i32_0 = arith.constant 0 : i32
    %2 = arith.cmpi ne, %1, %c0_i32_0 : i32
    scf.if %2 {
      %cst_10 = arith.constant 0.000000e+00 : f32
      %12 = vector.broadcast %cst_10 : f32 to vector<8x64xf32>
      %c0_11 = arith.constant 0 : index
      %c0_12 = arith.constant 0 : index
      %13 = vector.load %arg8[%c0_11, %c0_12] : memref<8x64xf32, #tpu.memory_space<vmem>>, vector<8x64xf32>
      tpu.vector_store %arg8[%c0_11, %c0_12], %12 {strides = array<i32>} : memref<8x64xf32, #tpu.memory_space<vmem>>, vector<8x64xf32>,
    } else {
    }
    %c0 = arith.constant 0 : index
    %c0_1 = arith.constant 0 : index
    %3 = vector.load %arg8[%c0, %c0_1] : memref<8x64xf32, #tpu.memory_space<vmem>>, vector<8x64xf32>
    %c0_2 = arith.constant 0 : index
    %c0_3 = arith.constant 0 : index
    %4 = vector.load %arg2[%c0_2, %c0_3] : memref<8x32xf32, #tpu.memory_space<vmem>>, vector<8x32xf32>
    %c0_4 = arith.constant 0 : index
    %c0_5 = arith.constant 0 : index
    %5 = vector.load %arg3[%c0_4, %c0_5] : memref<32x64xf32, #tpu.memory_space<vmem>>, vector<32x64xf32>
    %cst = arith.constant dense<0.000000e+00> : vector<8x64xf32>
    %6 = tpu.matmul %4, %5, %cst {dimension_numbers = #tpu.dot_dimension_numbers<[1], [0], [0], [1], [0, 0, 1, 1], [], []>} : vector<8x32xf32>, vector<32x64xf32>, vector<8x64xf32> -> vector<8x64xf32>
    %7 = arith.addf %3, %6 : vector<8x64xf32>
    %c0_6 = arith.constant 0 : index
    %c0_7 = arith.constant 0 : index
    %8 = vector.load %arg8[%c0_6, %c0_7] : memref<8x64xf32, #tpu.memory_space<vmem>>, vector<8x64xf32>
    tpu.vector_store %arg8[%c0_6, %c0_7], %7 {strides = array<i32>} : memref<8x64xf32, #tpu.memory_space<vmem>>, vector<8x64xf32>,
    %c0_i32_8 = arith.constant 0 : i32
    %9 = arith.cmpi eq, %arg1, %c0_i32_8 : i32
    %10 = arith.extui %9 : i1 to i32
    %c0_i32_9 = arith.constant 0 : i32
    %11 = arith.cmpi ne, %10, %c0_i32_9 : i32
    scf.if %11 {
      %c0_10 = arith.constant 0 : index
      %c0_11 = arith.constant 0 : index
      %12 = vector.load %arg8[%c0_10, %c0_11] : memref<8x64xf32, #tpu.memory_space<vmem>>, vector<8x64xf32>
      %c0_12 = arith.constant 0 : index
      %c0_13 = arith.constant 0 : index
      %13 = vector.load %arg4[%c0_12, %c0_13] : memref<1x64xf32, #tpu.memory_space<vmem>>, vector<1x64xf32>
      %14 = vector.broadcast %13 : vector<1x64xf32> to vector<8x64xf32>
      %15 = arith.addf %12, %14 : vector<8x64xf32>
      %cst_14 = arith.constant 0.000000e+00 : f32
      %16 = vector.broadcast %cst_14 : f32 to vector<8x64xf32>
      %17 = arith.maximumf %15, %16 : vector<8x64xf32>
      %c0_15 = arith.constant 0 : index
      %c0_16 = arith.constant 0 : index
      %18 = vector.load %arg5[%c0_15, %c0_16] : memref<1x64xf32, #tpu.memory_space<vmem>>, vector<1x64xf32>
      %cst_17 = arith.constant dense<0.000000e+00> : vector<1x8xf32>
      %19 = tpu.matmul %18, %17, %cst_17 {dimension_numbers = #tpu.dot_dimension_numbers<[1], [1], [0], [0], [0, 0, 1, 0], [], []>} : vector<1x64xf32>, vector<8x64xf32>, vector<1x8xf32> -> vector<1x8xf32>
      %c0_18 = arith.constant 0 : index
      %c0_19 = arith.constant 0 : index
      %20 = memref.load %arg6[%c0_18, %c0_19] : memref<1x1xf32, #tpu.memory_space<smem>>
      %21 = vector.broadcast %20 : f32 to vector<1x8xf32>
      %22 = arith.addf %19, %21 : vector<1x8xf32>
      %23 = arith.negf %22 : vector<1x8xf32>
      %24 = math.exp %23 : vector<1x8xf32>
      %cst_20 = arith.constant 1.000000e+00 : f32
      %25 = vector.broadcast %cst_20 : f32 to vector<1x8xf32>
      %26 = arith.addf %25, %24 : vector<1x8xf32>
      %27 = arith.divf %25, %26 : vector<1x8xf32>
      %28 = vector.shape_cast %27 : vector<1x8xf32> to vector<1x1x8xf32>
      %c0_21 = arith.constant 0 : index
      %c0_22 = arith.constant 0 : index
      %c0_23 = arith.constant 0 : index
      %29 = vector.load %arg7[%c0_21, %c0_22, %c0_23] : memref<1x1x8xf32, #tpu.memory_space<vmem>>, vector<1x1x8xf32>
      tpu.vector_store %arg7[%c0_21, %c0_22, %c0_23], %28 {strides = array<i32>} : memref<1x1x8xf32, #tpu.memory_space<vmem>>, vector<1x1x8xf32>,
    } else {
    }
    return
  }
  func.func @transform_0(%arg0: i32, %arg1: i32) -> (i32, i32) {
    %c0_i32 = arith.constant 0 : i32
    return %arg0, %arg1 : i32, i32
  }
  func.func @transform_1(%arg0: i32, %arg1: i32) -> (i32, i32) {
    %c0_i32 = arith.constant 0 : i32
    %c0_i32_0 = arith.constant 0 : i32
    return %arg1, %c0_i32 : i32, i32
  }
  func.func @transform_2(%arg0: i32, %arg1: i32) -> (i32, i32) {
    %c0_i32 = arith.constant 0 : i32
    %c0_i32_0 = arith.constant 0 : i32
    %c0_i32_1 = arith.constant 0 : i32
    return %c0_i32, %c0_i32_0 : i32, i32
  }
  func.func @transform_3(%arg0: i32, %arg1: i32) -> (i32, i32) {
    %c0_i32 = arith.constant 0 : i32
    %c0_i32_0 = arith.constant 0 : i32
    %c0_i32_1 = arith.constant 0 : i32
    return %c0_i32, %c0_i32_0 : i32, i32
  }
  func.func @transform_4(%arg0: i32, %arg1: i32) -> (i32, i32) {
    %c0_i32 = arith.constant 0 : i32
    %c0_i32_0 = arith.constant 0 : i32
    %c0_i32_1 = arith.constant 0 : i32
    return %c0_i32, %c0_i32_0 : i32, i32
  }
  func.func @transform_5(%arg0: i32, %arg1: i32) -> (i32, i32, i32) {
    %c0_i32 = arith.constant 0 : i32
    %c0_i32_0 = arith.constant 0 : i32
    %c0_i32_1 = arith.constant 0 : i32
    return %arg0, %c0_i32, %c0_i32_0 : i32, i32, i32
  }
}

</mosaic_0001>

<bundles_post_ra>
// kernel: tpu_custom_call.1
= control target key start
LH: loop header
LB: loop body
LE: loop exit
PB: predicated region body
PF: predicated region fallthrough
CT: control target
= control target key end

     0   :  { %11 = vsyncpa [#allocation5], 0  ;;  %s320_s0 = inlined_call_operand.hbm [shape: f32[8,32], index: 0, kind: input, shape index: {}]   ;;  %s321_s1 = inlined_call_operand.hbm [shape: f32[32,64], index: 1, kind: input, shape index: {}]   ;;  %s322_s2 = inlined_call_operand.vmem [shape: f32[1,64], index: 2, kind: input, shape index: {}]   ;;  %s323_s3 = inlined_call_operand.vmem [shape: f32[1,64], index: 3, kind: input, shape index: {}]   ;;  %s324_s4 = inlined_call_operand.<no memory space> [shape: f32[1,1], index: 4, kind: input, shape index: {}]   ;;  %s325_s5 = inlined_call_operand.hbm [shape: f32[1,1,8], index: 5, kind: output, shape index: {}]  }
   0x1   :  { %12 = vsyncpa [#allocation8], 0 }
   0x2   :  { %13 = vsyncpa [#allocation6], 0  ;;  %s19_s20 = sshll.u32 %s320_s0, 4  ;;  %s262_s21 = smov [#allocation4]   ;;  %s20_s20 = int_to_ptr.hbm [resolvable:$true] %s19_s20 }
   0x3   :  { %s21_s22 = sshll.u32 %s262_s21, 4  ;;  %s29_s25 = sshll.u32 %s321_s1, 4  ;;  %s22_s22 = int_to_ptr.vmem [resolvable:$true] %s21_s22  ;;  %s30_s25 = int_to_ptr.hbm [resolvable:$true] %s29_s25 }
   0x4   :  { %24 = dma.hbm_to_vmem [thread:$0]  %s20_s20, 128, %s22_s22, [#allocation5]  }
   0x5   :  { %s263_s26 = smov [#allocation7]   ;;  %s264_s28 = smov 128  }
   0x6   :  { %s31_s27 = sshll.u32 %s263_s26, 4  ;;  %s265_s29 = smov 8   ;;  %s32_s27 = int_to_ptr.vmem [resolvable:$true] %s31_s27 }
   0x7   :  { %37 = dma.hbm_to_vmem [thread:$0]  %s30_s25, 512, %s32_s27, [#allocation8], %s264_s28, %s264_s28, %s265_s29  }
   0x8   :  { %256 = dma.done.wait [#allocation5], 128  }
   0x9   :  { %257 = vsyncadd [#allocation5], 4294967168 }
   0xa   :  { %258 = dma.done.wait [#allocation8], 512  }
   0xb   :  { %259 = vsyncadd [#allocation8], 4294966784  ;;  %vm56_vm0 = vcmask 523264   ;;  %v266_v0 = vmov 0.0   ;;  %v63_v1 = vld [vmem:[#allocation7 + $0x18] sm:$0xff]  ;;  %v62_v2 = vld [vmem:[#allocation7 + $0x10] sm:$0xff]  ;;  %v103_v14 = vstv %s324_s4 }
   0xc   :  { %57 = vst.msk [vmem:[#allocation2] sm:$0xff] %vm56_vm0, %v266_v0  ;;  %80 = vmatpush.msra.mxu0 %v63_v1  ;;  %v61_v3 = vld [vmem:[#allocation7 + $0x8] sm:$0xff]  ;;  %v60_v4 = vld [vmem:[#allocation7] sm:$0xff]  ;;  %v59_v5 = vld [vmem:[#allocation4] sm:$0xff]  ;;  %vm64_vm1 = vcmask 261120   ;;  %s158_s4 = sshll.u32 %s325_s5, 4  ;;  %s159_s4 = int_to_ptr.hbm [resolvable:$true] %s158_s4 }
   0xd   :  { %v179_v9 = vld [vmem:[%s322_s2] ss:$0 sm:$0xff]  ;;  %s267_s2 = smov [#allocation9]   ;;  %vm149_vm5 = vcmask 57344  }
   0xe   :  { %81 = vmatpush.msra.mxu0 %v62_v2  ;;  %v101_v13 = vld [vmem:[%s323_s3] sm:$0x1]  ;;  %s156_s3 = sshll.u32 %s267_s2, 4  ;;  %s157_s3 = int_to_ptr.vmem [resolvable:$true] %s156_s3 }
  0x10   :  { %82 = vmatpush.msra.mxu0 %v61_v3 }
  0x12   :  { %83 = vmatpush.msra.mxu0 %v60_v4 }
  0x13   :  { %169 = vmatmul.msk.f32.vlgmr.msra.gmra.mxu0 %vm64_vm1, %v59_v5  ;;  %v58_v6 = vld [vmem:[#allocation2] sm:$0xff] }
  0x90   :  { %v85_v7 = vpop.f32.mrf.mxu0 }
  0x91   :  { %v88_v8 = vadd.f32 %v85_v7, %v58_v6 }
  0x93   :  { %90 = vst.msk [vmem:[#allocation2] sm:$0xff] %vm56_vm0, %v88_v8 }
  0x9a   :  { %v94_v10 = vld [vmem:[#allocation2] sm:$0xff] }
  0x9b   :  { %v99_v11 = vadd.f32 %v179_v9, %v94_v10 }
  0x9d   :  { %v100_v12 = vmax.f32 %v99_v11, 0.0 }
  0x9f   :  { %170 = vmatpush.xpose.msk.msra.mxu1 %vm56_vm0, %v100_v12 }
  0xa2   :  { %171 = vmatmul.msk.f32.vlgmr.msra.gmra.mxu1 %vm56_vm0, %v101_v13 }
 0x11f   :  { %v127_v15 = vpop.f32.mrf.mxu1 }
 0x120   :  { %v128_v16 = vadd.f32 %v127_v15, %v103_v14 }
 0x122   :  { %v172_v17 = vmul.f32 -1.442695, %v128_v16 }
 0x124   :  { %180 = vpow2.f32 %v172_v17 }
 0x12a   :  { %v181_v18 = vpop.eup %180 }
 0x12b   :  { %v133_v19 = vadd.f32 1.0, %v181_v18 }
 0x12d   :  { %182 = vrcp.f32 %v133_v19  ;;  %v145_v23 = vand.u32 2147483648, %v133_v19  ;;  %v143_v25 = vand.u32 2147483647, %v133_v19  ;;  %vm139_vm3 = vweird.f32 %v133_v19 }
 0x12f   :  { %v146_v27 = vor.u32 1.1754944e-38, %v145_v23  ;;  %vm144_vm6 = vcmp.eq.f32.partialorder %v143_v25, 8.507059e+37 }
 0x133   :  { %v183_v20 = vpop.eup %182 }
 0x134   :  { %v135_v21 = vmul.f32 %v183_v20, %v133_v19  ;;  %vm140_vm2 = vweird.f32 %v183_v20 }
 0x135   :  { %vm141_vm4 = vmor %vm139_vm3, %vm140_vm2 }
 0x136   :  { %v136_v22 = vsub.f32 1.0, %v135_v21 }
 0x138   :  { %v137_v24 = vmul.f32 %v183_v20, %v136_v22 }
 0x13a   :  { %v138_v26 = vadd.f32 %v183_v20, %v137_v24 }
 0x13c   :  { %v142_v28 = vsel %vm141_vm4, %v183_v20, %v138_v26 }
 0x13d   :  { %v147_v29 = vsel %vm144_vm6, %v146_v27, %v142_v28 }
 0x13e   :  { %150 = vst.msk [vmem:[#allocation9] sm:$0x1] %vm149_vm5, %v147_v29 }
 0x13f   :  { %161 = dma.vmem_to_hbm [thread:$0]  %s157_s3, 16, %s159_s4, [#allocation6]  }
 0x140   :  { %260 = dma.done.wait [#allocation6], 16  }
 0x141   :  { %261 = vsyncadd [#allocation6], 4294967280 }
 0x142   :  { %166 = vsyncpa [#allocation5], 1 }
 0x143   :  { %167 = vsyncpa [#allocation8], 1 }
 0x144   :  { %168 = vsyncpa [#allocation6], 1 }

</bundles_post_ra>
